<compile_context>
chip_gen: v5e
topology: v5e:2x2
jax: 0.10.0
libtpu: 0.0.40
codegen_flags: <defaults>
</compile_context>

<pallas_src>
import jax
import jax.numpy as jnp
from jax import lax
from jax.experimental import pallas as pl
from jax.experimental.pallas import tpu as pltpu


def _label_attention_kernel(code_ref, proj_ref, text_ref, att_ref, out_ref):
    # code_ref: (tl, H)  tile of code_features                          [bf16]
    # proj_ref: (T, H)   tanh(text @ W.T) for this batch item           [bf16]
    # text_ref: (T, H)   this batch item's text features                [bf16]
    # att_ref:  (tl, T)  attention tile, already transposed             [att dtype]
    # out_ref:  (tl, H)  weighted-output tile                           [out dtype]

    # Scores produced already transposed: (tl, T).  The H-contraction runs on
    # the MXU, so no XLU transpose; softmax reduction is along the lane axis
    # and the att output tile is written lane-dense.
    scores = lax.dot_general(
        code_ref[...], proj_ref[...],
        dimension_numbers=(((1,), (1,)), ((), ())),
        preferred_element_type=jnp.float32)                      # (tl, T) f32

    # Softmax over the sequence axis (PyTorch softmax(dim=1) before transpose).
    m = jnp.max(scores, axis=-1, keepdims=True)                  # (tl, 1)
    e = jnp.exp(scores - m)                                      # (tl, T)
    denom = jnp.sum(e, axis=-1, keepdims=True)                   # (tl, 1)
    att = e * pl.reciprocal(denom, approx=True)                  # (tl, T)

    # Store the bf16 att and use the SAME tensor for the weighted matmul so
    # the two outputs are mutually consistent.
    att_bf16 = att.astype(jnp.bfloat16)
    att_ref[...] = att_bf16.astype(att_ref.dtype)
    out_ref[...] = lax.dot_general(
        att_bf16, text_ref[...],
        dimension_numbers=(((1,), (0,)), ((), ())),              # att @ text
        preferred_element_type=jnp.float32).astype(out_ref.dtype)


def _vmem_capacity_bytes():
    """Physical VMEM of the current chip (conservative fallback: v7x 64 MiB)."""
    try:
        info = pltpu.get_tpu_info()
        cap = getattr(info, "vmem_capacity_bytes", None)
        if cap:
            return int(cap)
    except Exception:
        pass
    return 64 << 20


def _vmem_estimate(tl, T, H, att_size, out_size):
    return (2 * T * H * 2          # proj block (bf16), double buffered
            + 2 * T * H * 2        # text block (bf16), double buffered
            + 2 * tl * H * 2       # code tile (bf16)
            + 2 * tl * T * att_size  # att output tile
            + 2 * tl * H * out_size  # weighted output tile
            + 6 * tl * T * 4       # f32 score/softmax temporaries
            + (4 << 20))           # headroom


def label_attention(text_features, code_features, proj_weight,
                    attention_mask=None, *, label_tile=None,
                    att_dtype=jnp.bfloat16):
    """Pallas equivalent of LabelAttention.forward (non-"bios kg" code_features).

    attention_mask is accepted for signature parity but unused, exactly as in
    the reference PyTorch forward (callers expecting masked softmax must mask
    upstream).  att_weights are emitted in `att_dtype` (default bf16; pass
    text_features.dtype to exactly match the PyTorch output dtype).
    Returns (att_weights (bs, L, T), weighted_output (bs, L, H)).
    """
    del attention_mask  # unused, matches the PyTorch reference
    bs, T, H = text_features.shape
    L, H2 = code_features.shape
    assert H2 == H
    out_dtype = text_features.dtype
    att_size = jnp.dtype(att_dtype).itemsize
    out_size = jnp.dtype(out_dtype).itemsize

    vmem_cap = _vmem_capacity_bytes()
    vmem_usable = int(vmem_cap * 0.85)

    # bf16 operands for the MXU (f32 accumulation inside the kernel); halves
    # HBM->VMEM traffic for the (T, H) blocks.
    text_bf16 = text_features.astype(jnp.bfloat16)
    code_bf16 = code_features.astype(jnp.bfloat16)
    w_bf16 = proj_weight.astype(jnp.bfloat16)

    # Projection hoisted into plain XLA so the kernel grid is fully parallel
    # (both TensorCores busy even at bs == 1 on v7x).
    pre = jnp.einsum("bth,oh->bto", text_bf16, w_bf16,
                     preferred_element_type=jnp.float32)          # (bs, T, H)
    proj_bf16 = jnp.tanh(pre).astype(jnp.bfloat16)

    # Label tile: per-generation default, multiple of 16 (bf16 packs two rows
    # per sublane), auto-shrunk until the VMEM estimate fits the chip budget.
    if label_tile is None:
        label_tile = 256 if vmem_cap >= (100 << 20) else 128
    tl = min(label_tile, L)
    tl = max(16, ((tl + 15) // 16) * 16)
    while tl > 16 and _vmem_estimate(tl, T, H, att_size, out_size) > vmem_usable:
        tl = max(16, ((tl // 2 + 15) // 16) * 16)

    lp = ((L + tl - 1) // tl) * tl
    if lp != L:
        code_bf16 = jnp.pad(code_bf16, ((0, lp - L), (0, 0)))
    n_l = lp // tl

    vmem_bytes = int(min(max(_vmem_estimate(tl, T, H, att_size, out_size),
                             16 << 20), vmem_usable))

    cost = pl.CostEstimate(
        flops=int(2 * bs * lp * T * H * 2),          # scores + weighted matmuls
        transcendentals=int(bs * lp * T),            # exp in softmax
        bytes_accessed=int(lp * H * 2 + 2 * bs * T * H * 2
                           + bs * lp * T * att_size + bs * lp * H * out_size),
    )

    att_p, weighted_p = pl.pallas_call(
        _label_attention_kernel,
        out_shape=(
            jax.ShapeDtypeStruct((bs, lp, T), att_dtype),
            jax.ShapeDtypeStruct((bs, lp, H), out_dtype),
        ),
        grid_spec=pltpu.PrefetchScalarGridSpec(
            num_scalar_prefetch=0,
            grid=(bs, n_l),
            in_specs=[
                pl.BlockSpec((tl, H), lambda b, l: (l, 0)),           # code tile
                pl.BlockSpec((None, T, H), lambda b, l: (b, 0, 0)),   # projection
                pl.BlockSpec((None, T, H), lambda b, l: (b, 0, 0)),   # text
            ],
            out_specs=[
                pl.BlockSpec((None, tl, T), lambda b, l: (b, l, 0)),  # att (lane-dense T)
                pl.BlockSpec((None, tl, H), lambda b, l: (b, l, 0)),  # weighted
            ],
        ),
        compiler_params=pltpu.CompilerParams(
            dimension_semantics=("parallel", "parallel"),
            vmem_limit_bytes=vmem_bytes,
        ),
        cost_estimate=cost,
    )(code_bf16, proj_bf16, text_bf16)

    if lp != L:
        att_p = att_p[:, :L, :]
        weighted_p = weighted_p[:, :L, :]
    return att_p, weighted_p


def label_attention_ref_f32(text_features, code_features, proj_weight):
    # Plain-JAX f32 reference mirroring the PyTorch forward exactly.
    projected = jnp.tanh(text_features @ proj_weight.T)          # (bs, T, H)
    att = projected @ code_features.T                            # (bs, T, L)
    att = jax.nn.softmax(att, axis=1)                            # over T (dim=1)
    att = jnp.swapaxes(att, 1, 2)                                # (bs, L, T)
    weighted = att @ text_features                               # (bs, L, H)
    return att, weighted


def label_attention_ref_mixed(text_features, code_features, proj_weight):
    # Reference with the same bf16-operand / f32-accumulate policy as the kernel.
    t = text_features.astype(jnp.bfloat16)
    c = code_features.astype(jnp.bfloat16)
    w = proj_weight.astype(jnp.bfloat16)
    pre = jnp.einsum("bth,oh->bto", t, w, preferred_element_type=jnp.float32)
    proj = jnp.tanh(pre).astype(jnp.bfloat16)
    scores = jnp.einsum("lh,bth->blt", c, proj, preferred_element_type=jnp.float32)
    att = jax.nn.softmax(scores, axis=-1)
    att_bf16 = att.astype(jnp.bfloat16)
    weighted = jnp.einsum("blt,bth->blh", att_bf16, t,
                          preferred_element_type=jnp.float32)
    return att_bf16, weighted.astype(text_features.dtype)


if __name__ == "__main__":
    bs, T, H, L = 2, 256, 128, 32   # small but lane/sublane-aligned shapes

    key = jax.random.PRNGKey(0)
    k_text, k_code, k_w = jax.random.split(key, 3)

    text_features = jax.random.normal(k_text, (bs, T, H), dtype=jnp.float32)
    code_features = jax.random.normal(k_code, (L, H), dtype=jnp.float32) * (1.0 / H ** 0.5)
    # Deterministic init of nn.Linear(H, H, bias=False) weight, shape (H, H).
    proj_weight = jax.random.normal(k_w, (H, H), dtype=jnp.float32) * (1.0 / H ** 0.5)
    attention_mask = jnp.ones((bs, T), dtype=jnp.float32)  # unused by forward

    att, weighted = label_attention(text_features, code_features, proj_weight,
                                    attention_mask)
    jax.block_until_ready((att, weighted))

    assert att.shape == (bs, L, T) and weighted.shape == (bs, L, H)
    assert att.dtype == jnp.bfloat16 and weighted.dtype == text_features.dtype

    att_f32 = att.astype(jnp.float32)

    # Tight check against a reference with identical dtype policy (small extra
    # slack for the approx EUP reciprocal used in the kernel's softmax).
    att_m, w_m = label_attention_ref_mixed(text_features, code_features, proj_weight)
    assert jnp.allclose(att_f32, att_m.astype(jnp.float32), atol=5e-3, rtol=5e-3)
    assert jnp.allclose(weighted, w_m, atol=1e-2, rtol=1e-2)

    # Loose check against the exact f32 PyTorch-equivalent math.
    att_f, w_f = label_attention_ref_f32(text_features, code_features, proj_weight)
    assert jnp.allclose(att_f32, att_f, atol=5e-2, rtol=5e-2)
    assert jnp.allclose(weighted, w_f, atol=5e-2, rtol=5e-2)

    print("KERNEL_OK")
</pallas_src>

<mosaic_0001>
module attributes {stable_mosaic.version = 11 : i64} {
  func.func @_label_attention_kernel(%arg0: i32, %arg1: i32, %arg2: memref<32x128xbf16, #tpu.memory_space<vmem>>, %arg3: memref<1x256x128xbf16, #tpu.memory_space<vmem>>, %arg4: memref<1x256x128xbf16, #tpu.memory_space<vmem>>, %arg5: memref<1x32x256xbf16, #tpu.memory_space<vmem>>, %arg6: memref<1x32x128xf32, #tpu.memory_space<vmem>>) attributes {dimension_semantics = [#tpu.dimension_semantics<parallel>, #tpu.dimension_semantics<parallel>], iteration_bounds = array<i64: 2, 1>, scalar_prefetch = 0 : i64, scratch_operands = 0 : i64, tpu.core_type = #tpu.core_type<tc>, window_params = [{transform_indices = @transform_0, window_bounds = array<i64: 32, 128>}, {transform_indices = @transform_1, window_bounds = array<i64: 1, 256, 128>}, {transform_indices = @transform_2, window_bounds = array<i64: 1, 256, 128>}, {transform_indices = @transform_3, window_bounds = array<i64: 1, 32, 256>}, {transform_indices = @transform_4, window_bounds = array<i64: 1, 32, 128>}]} {
    %c0 = arith.constant 0 : index
    %c0_0 = arith.constant 0 : index
    %0 = vector.load %arg2[%c0, %c0_0] : memref<32x128xbf16, #tpu.memory_space<vmem>>, vector<32x128xbf16>
    %c0_1 = arith.constant 0 : index
    %c0_2 = arith.constant 0 : index
    %c0_3 = arith.constant 0 : index
    %1 = vector.load %arg3[%c0_1, %c0_2, %c0_3] : memref<1x256x128xbf16, #tpu.memory_space<vmem>>, vector<1x256x128xbf16>
    %2 = vector.shape_cast %1 : vector<1x256x128xbf16> to vector<256x128xbf16>
    %cst = arith.constant dense<0.000000e+00> : vector<32x256xf32>
    %3 = tpu.matmul %0, %2, %cst {dimension_numbers = #tpu.dot_dimension_numbers<[1], [1], [0], [0], [0, 0, 1, 0], [], []>} : vector<32x128xbf16>, vector<256x128xbf16>, vector<32x256xf32> -> vector<32x256xf32>
    %cst_4 = arith.constant dense<0xFF800000> : vector<32xf32>
    %4 = vector.multi_reduction <maximumf>, %3, %cst_4 [1] : vector<32x256xf32> to vector<32xf32>
    %5 = vector.shape_cast %4 : vector<32xf32> to vector<32x1xf32>
    %6 = vector.broadcast %5 : vector<32x1xf32> to vector<32x256xf32>
    %7 = arith.subf %3, %6 : vector<32x256xf32>
    %8 = math.exp %7 : vector<32x256xf32>
    %cst_5 = arith.constant dense<0.000000e+00> : vector<32xf32>
    %9 = vector.multi_reduction <add>, %8, %cst_5 [1] : vector<32x256xf32> to vector<32xf32>
    %10 = vector.shape_cast %9 : vector<32xf32> to vector<32x1xf32>
    %11 = tpu.reciprocal %10 {approx = true} : vector<32x1xf32> -> vector<32x1xf32>
    %12 = vector.broadcast %11 : vector<32x1xf32> to vector<32x256xf32>
    %13 = arith.mulf %8, %12 : vector<32x256xf32>
    %14 = arith.truncf %13 : vector<32x256xf32> to vector<32x256xbf16>
    %c0_6 = arith.constant 0 : index
    %c0_7 = arith.constant 0 : index
    %c0_8 = arith.constant 0 : index
    %15 = vector.load %arg5[%c0_6, %c0_7, %c0_8] : memref<1x32x256xbf16, #tpu.memory_space<vmem>>, vector<1x32x256xbf16>
    %16 = vector.shape_cast %15 : vector<1x32x256xbf16> to vector<32x256xbf16>
    %17 = vector.shape_cast %14 : vector<32x256xbf16> to vector<1x32x256xbf16>
    tpu.vector_store %arg5[%c0_6, %c0_7, %c0_8], %17 {strides = array<i32>} : memref<1x32x256xbf16, #tpu.memory_space<vmem>>, vector<1x32x256xbf16>,
    %c0_9 = arith.constant 0 : index
    %c0_10 = arith.constant 0 : index
    %c0_11 = arith.constant 0 : index
    %18 = vector.load %arg4[%c0_9, %c0_10, %c0_11] : memref<1x256x128xbf16, #tpu.memory_space<vmem>>, vector<1x256x128xbf16>
    %19 = vector.shape_cast %18 : vector<1x256x128xbf16> to vector<256x128xbf16>
    %cst_12 = arith.constant dense<0.000000e+00> : vector<32x128xf32>
    %20 = tpu.matmul %14, %19, %cst_12 {dimension_numbers = #tpu.dot_dimension_numbers<[1], [0], [0], [1], [0, 0, 1, 1], [], []>} : vector<32x256xbf16>, vector<256x128xbf16>, vector<32x128xf32> -> vector<32x128xf32>
    %c0_13 = arith.constant 0 : index
    %c0_14 = arith.constant 0 : index
    %c0_15 = arith.constant 0 : index
    %21 = vector.load %arg6[%c0_13, %c0_14, %c0_15] : memref<1x32x128xf32, #tpu.memory_space<vmem>>, vector<1x32x128xf32>
    %22 = vector.shape_cast %21 : vector<1x32x128xf32> to vector<32x128xf32>
    %23 = vector.shape_cast %20 : vector<32x128xf32> to vector<1x32x128xf32>
    tpu.vector_store %arg6[%c0_13, %c0_14, %c0_15], %23 {strides = array<i32>} : memref<1x32x128xf32, #tpu.memory_space<vmem>>, vector<1x32x128xf32>,
    return
  }
  func.func @transform_0(%arg0: i32, %arg1: i32) -> (i32, i32) {
    %c0_i32 = arith.constant 0 : i32
    %c0_i32_0 = arith.constant 0 : i32
    return %arg1, %c0_i32 : i32, i32
  }
  func.func @transform_1(%arg0: i32, %arg1: i32) -> (i32, i32, i32) {
    %c0_i32 = arith.constant 0 : i32
    %c0_i32_0 = arith.constant 0 : i32
    %c0_i32_1 = arith.constant 0 : i32
    return %arg0, %c0_i32, %c0_i32_0 : i32, i32, i32
  }
  func.func @transform_2(%arg0: i32, %arg1: i32) -> (i32, i32, i32) {
    %c0_i32 = arith.constant 0 : i32
    %c0_i32_0 = arith.constant 0 : i32
    %c0_i32_1 = arith.constant 0 : i32
    return %arg0, %c0_i32, %c0_i32_0 : i32, i32, i32
  }
  func.func @transform_3(%arg0: i32, %arg1: i32) -> (i32, i32, i32) {
    %c0_i32 = arith.constant 0 : i32
    %c0_i32_0 = arith.constant 0 : i32
    return %arg0, %arg1, %c0_i32 : i32, i32, i32
  }
  func.func @transform_4(%arg0: i32, %arg1: i32) -> (i32, i32, i32) {
    %c0_i32 = arith.constant 0 : i32
    %c0_i32_0 = arith.constant 0 : i32
    return %arg0, %arg1, %c0_i32 : i32, i32, i32
  }
}

</mosaic_0001>

<bundles_post_ra>
// kernel: tpu_custom_call.1
= control target key start
LH: loop header
LB: loop body
LE: loop exit
PB: predicated region body
PF: predicated region fallthrough
CT: control target
= control target key end

     0   :  { %10 = vsyncpa [#allocation3], 0  ;;  %s1745_s0 = inlined_call_operand.hbm [shape: bf16[32,128], index: 0, kind: input, shape index: {}]   ;;  %s1746_s1 = inlined_call_operand.hbm [shape: bf16[2,256,128], index: 1, kind: input, shape index: {}]   ;;  %s1747_s2 = inlined_call_operand.hbm [shape: bf16[2,256,128], index: 2, kind: input, shape index: {}]   ;;  %s1748_s3 = inlined_call_operand.hbm [shape: bf16[2,32,256], index: 3, kind: output, shape index: {0}]   ;;  %s1749_s4 = inlined_call_operand.hbm [shape: f32[2,32,128], index: 4, kind: output, shape index: {1}]  }
   0x1   :  { %11 = vsyncpa [#allocation6], 0 }
   0x2   :  { %13 = vsyncpa [#allocation6 + $0x1], 0 }
   0x3   :  { %14 = vsyncpa [#allocation4], 0 }
   0x4   :  { %16 = vsyncpa [#allocation4 + $0x1], 0 }
   0x5   :  { %17 = vsyncpa [#allocation10], 0 }
   0x6   :  { %19 = vsyncpa [#allocation10 + $0x1], 0  ;;  %s1499_s15 = smov 0   ;;  %s1501_s16 = smov 0  }
   0x7   :  { %s1503_s17 = smov 0   ;;  %s1505_s18 = smov 0  }
   0x8   :  { %s1507_s19 = smov 0   ;;  %s1509_s20 = smov 0  }
   0x9 LB: > { %s37_s21 = sadd.s32 1, %s1463_s19  ;;  %s70_s22 = sadd.s32 1, %s1455_s17  ;;  %s1467_s20 = sphi %s1509_s20, %s25_s20   ;;  %s1463_s19 = sphi %s1507_s19, %s1759_s19   ;;  %s1459_s18 = sphi %s1505_s18, %s1758_s18   ;;  %s1455_s17 = sphi %s1503_s17, %s1757_s17   ;;  %s1451_s16 = sphi %s1501_s16, %s1756_s16   ;;  %s1447_s15 = sphi %s1499_s15, %s1755_s15  }
   0xa   : > { %p39_p0 = scmp.ge.s32.totalorder %s37_s21, 2  ;;  %p77_p1 = scmp.ne.s32.totalorder %s1455_s17, %s1451_s16 }
   0xb   : > { %p78_p2 = scmp.eq.s32.totalorder %s1467_s20, 0  ;;  %p953_p4 = scmp.ge.s32.totalorder %s1467_s20, 2 }
   0xc   : > { %s1761_s21 = smov (%p39_p0, %s37_s21), 0  ;;  %p1179_p6 = scmp.lt.s32.totalorder %s1467_s20, 2 }
   0xd   : > { %p1539_p3 = por %p78_p2, %p77_p1  ;;  %s67_s24 = ssub.s32 %s1463_s19, %s1761_s21 }
   0xe   : > { %p68_p5 = scmp.eq.s32.totalorder %s67_s24, 0  ;;  %s206_s25 = sand.u32 1, %s1467_s20  }
   0xf   : > { %s208_s26 = sand.u32 1, %s1455_s17   ;;  %s1110_s29 = sshll.u32 %s1463_s19, 7 }
  0x10   : > { %s1550_s27 = scalar_select %p68_p5, %s1455_s17, %s70_s22  }
  0x11   : > { %s954_s28 = sshll.u32 %s208_s26, 7  ;;  %s215_s6 = scalar_lea.hbm %s1746_s1, %s1110_s29 }
  0x12   : > { %s210_s7 = scalar_lea.vmem [#allocation5], %s954_s28  ;;  %s216_s9 = sshll.u32 %s215_s6, 4  ;;  %s217_s9 = int_to_ptr.hbm [resolvable:$true] %s216_s9 }
  0x13   : > { %s218_s8 = sshll.u32 %s210_s7, 4  ;;  %p1558_p7 = pnand %p1179_p6, %p1539_p3  ;;  %s219_s8 = int_to_ptr.vmem [resolvable:$true] %s218_s8 }
  0x14   : > { %s237_s13 = scalar_lea.hbm %s1747_s2, %s1110_s29  ;;  %s1565_s14 = scalar_lea.sflag [#allocation6], %s206_s25 }
  0x15   : > { %s1469_s22 = smov 64   ;;  %s1470_s24 = smov 4  }
  0x16   : > { %1167 = dma.hbm_to_vmem [thread:$0]  (!%p1558_p7), %s217_s9, 2048, %s219_s8, %s1565_s14, %s1469_s22, %s1469_s22, %s1470_s24  }
  0x17   : > { %s238_s23 = sshll.u32 %s237_s13, 4  ;;  %s232_s26 = scalar_lea.vmem [#allocation7], %s954_s28  ;;  %s239_s23 = int_to_ptr.hbm [resolvable:$true] %s238_s23 }
  0x18   : > { %s240_s30 = sshll.u32 %s232_s26, 4  ;;  %s1574_s5 = sadd.s32 4294967295, %s1467_s20   ;;  %s241_s30 = int_to_ptr.vmem [resolvable:$true] %s240_s30 }
  0x19   : > { %s950_s29 = sadd.s32 4294967294, %s1467_s20   ;;  %p83_p8 = scmp.ne.s32.totalorder %s1451_s16, %s1447_s15 }
  0x1a   : > { %p84_p9 = scmp.eq.s32.totalorder %s1574_s5, 0  ;;  %p135_p10 = scmp.eq.s32.totalorder %s1574_s5, 1 }
  0x1b   : > { %p141_p11 = scmp.eq.s32.totalorder %s950_s29, 1  ;;  %p951_p12 = scmp.ge.s32.totalorder %s1467_s20, 1 }
  0x1c   : > { %p1584_p13 = por %p84_p9, %p83_p8  ;;  %p1591_p0 = por %p135_p10, %p77_p1 }
  0x1d   : > { %p1595_p2 = por %p141_p11, %p83_p8  ;;  %p176_p3 = scmp.lt.s32.totalorder %s1467_s20, 3 }
  0x1e   : > { %s190_s9 = sshll.u32 %s1745_s0, 4  ;;  %s1471_s11 = smov [#allocation2]   ;;  %s191_s9 = int_to_ptr.hbm [resolvable:$true] %s190_s9 }
  0x1f   : > { %p177_p5 = pnand %p951_p12, %p176_p3  ;;  %s192_s12 = sshll.u32 %s1471_s11, 4  ;;  %s193_s12 = int_to_ptr.vmem [resolvable:$true] %s192_s12 }
  0x20   : > { %1170 = dma.hbm_to_vmem [thread:$0]  (!%p1558_p7), %s239_s23, 2048, %s241_s30, %s1565_s14, %s1469_s22, %s1469_s22, %s1470_s24  }
  0x21   : > { %p1160_p6 = pneg %p177_p5  ;;  %252 = sbr.rel (%p177_p5) target bundleno = 666 (0x29a), region = 32 }
  0x23   : > { %p1161_p1 = pnand %p1160_p6, %p84_p9 }
  0x25   : > { %1163 = dma.hbm_to_vmem [thread:$0]  (!%p1161_p1), %s191_s9, 256, %s193_s12, [#allocation3], %s1469_s22, %s1469_s22, %s1470_s24  }
  0x26   : > { %1430 = dma.done.wait (%p84_p9), [#allocation3], 256  }
  0x27   : > { %1432 = vsyncadd (%p84_p9), [#allocation3], 4294967040  ;;  %s259_s13 = sand.u32 1, %s1574_s5   ;;  %s1620_s10 = sand.u32 1, %s1451_s16  }
  0x28   : > { %s962_s14 = sshll.u32 %s1620_s10, 7  ;;  %s260_s23 = scalar_lea.sflag [#allocation6], %s259_s13 }
  0x29   : > { %s1625_s26 = scalar_lea.vmem [#allocation5], %s962_s14 }
  0x2a   : > { %1434 = dma.done.wait (%p1584_p13), %s260_s23, 4096  }
  0x2b   : > { %1436 = vsyncadd (%p1584_p13), %s260_s23, 4294963200  ;;  %v1121_v0 = vld [vmem:[%s1625_s26 + $0x38] sm:$0xff]  ;;  %v1120_v2 = vld [vmem:[%s1625_s26 + $0x30] sm:$0xff]  ;;  %s1649_s22 = scalar_lea.vmem [#allocation7], %s962_s14  ;;  %s964_s24 = sshll.u32 %s1620_s10, 5 }
  0x2c   : > { %v1129_v1 = vld [vmem:[%s1625_s26 + $0x78] sm:$0xff]  ;;  %456 = vmatpush.bf16.xpose.msra.mxu0 %v1121_v0  ;;  %v1128_v3 = vld [vmem:[%s1625_s26 + $0x70] sm:$0xff]  ;;  %v1119_v4 = vld [vmem:[%s1625_s26 + $0x28] sm:$0xff]  ;;  %s1674_s30 = scalar_lea.vmem [#allocation8], %s964_s24  ;;  %s1146_s29 = sshll.u32 %s1459_s18, 5 }
  0x2d   : > { %475 = vmatpush.bf16.xpose.msra.mxu1 %v1129_v1  ;;  %v1127_v5 = vld [vmem:[%s1625_s26 + $0x68] sm:$0xff]  ;;  %v1118_v6 = vld [vmem:[%s1625_s26 + $0x20] sm:$0xff]  ;;  %v1117_v8 = vld [vmem:[%s1625_s26 + $0x18] sm:$0xff]  ;;  %s773_s5 = sshll.u32 %s1674_s30, 4  ;;  %s772_s8 = scalar_lea.hbm %s1748_s3, %s1146_s29  ;;  %s774_s5 = int_to_ptr.vmem [resolvable:$true] %s773_s5 }
  0x2e   : > { %v1126_v7 = vld [vmem:[%s1625_s26 + $0x60] sm:$0xff]  ;;  %v1125_v9 = vld [vmem:[%s1625_s26 + $0x58] sm:$0xff]  ;;  %v1116_v10 = vld [vmem:[%s1625_s26 + $0x10] sm:$0xff]  ;;  %s775_s9 = sshll.u32 %s772_s8, 4  ;;  %s753_s11 = scalar_lea.sflag [#allocation4], %s1620_s10  ;;  %s776_s9 = int_to_ptr.hbm [resolvable:$true] %s775_s9 }
  0x2f   : > { %v1124_v11 = vld [vmem:[%s1625_s26 + $0x50] sm:$0xff]  ;;  %v1115_v12 = vld [vmem:[%s1625_s26 + $0x8] sm:$0xff]  ;;  %v1114_v14 = vld [vmem:[%s1625_s26] sm:$0xff]  ;;  %s1363_s12 = sshra.s32 %s776_s9, 4  ;;  %s1364_s12 = int_to_ptr.hbm [resolvable:$true] %s1363_s12 }
  0x30   : > { %v1123_v13 = vld [vmem:[%s1625_s26 + $0x48] sm:$0xff]  ;;  %v1122_v15 = vld [vmem:[%s1625_s26 + $0x40] sm:$0xff]  ;;  %v1112_v16 = vld [vmem:[#allocation2] sm:$0xff]  ;;  %s1365_s13 = scalar_lea.hbm %s1364_s12, 32  ;;  %s1369_s26 = scalar_lea.hbm %s1748_s3, 64 }
  0x31   : > { %v1113_v17 = vld [vmem:[#allocation2 + $0x8] sm:$0xff]  ;;  %v1136_v40 = vld [vmem:[%s1649_s22 + $0x30] sm:$0xff]  ;;  %p1366_p7 = scmp.ne.s32.totalorder %s1364_s12, %s1365_s13  ;;  %p1370_p10 = scmp.lt.s32.totalorder %s1364_s12, %s1748_s3 }
  0x32   : > { %v1137_v35 = vld [vmem:[%s1649_s22 + $0x38] sm:$0xff]  ;;  %v1144_v41 = vld [vmem:[%s1649_s22 + $0x70] sm:$0xff]  ;;  %p1371_p11 = scmp.lt.s32.totalorder %s1369_s26, %s1365_s13 }
  0x33   : > { %v1145_v36 = vld [vmem:[%s1649_s22 + $0x78] sm:$0xff]  ;;  %710 = vmatpush.bf16.msra.mxu2 %v1137_v35  ;;  %p1367_p8 = pnand %p1366_p7, %p1591_p0 }
  0x34   : > { %457 = vmatpush.bf16.xpose.msra.mxu0 %v1120_v2  ;;  %729 = vmatpush.bf16.msra.mxu3 %v1145_v36  ;;  %v1135_v2 = vld [vmem:[%s1649_s22 + $0x28] sm:$0xff]  ;;  %p1372_p12 = por %p1371_p11, %p1370_p10 }
  0x35   : > { %476 = vmatpush.bf16.xpose.msra.mxu1 %v1128_v3  ;;  %v1143_v3 = vld [vmem:[%s1649_s22 + $0x68] sm:$0xff]  ;;  %p1368_p9 = pneg %p1367_p8 }
  0x37   : > { %711 = vmatpush.bf16.msra.mxu2 %v1136_v40  ;;  %p1373_p13 = pnand %p1372_p12, %p1368_p9 }
  0x38   : > { %730 = vmatpush.bf16.msra.mxu3 %v1144_v41 }
  0x3b   : > { %712 = vmatpush.bf16.msra.mxu2 %v1135_v2 }
  0x3c   : > { %458 = vmatpush.bf16.xpose.msra.mxu0 %v1119_v4  ;;  %731 = vmatpush.bf16.msra.mxu3 %v1143_v3  ;;  %v1134_v4 = vld [vmem:[%s1649_s22 + $0x20] sm:$0xff] }
  0x3d   : > { %477 = vmatpush.bf16.xpose.msra.mxu1 %v1127_v5  ;;  %v1142_v5 = vld [vmem:[%s1649_s22 + $0x60] sm:$0xff] }
  0x3f   : > { %713 = vmatpush.bf16.msra.mxu2 %v1134_v4 }
  0x40   : > { %732 = vmatpush.bf16.msra.mxu3 %v1142_v5 }
  0x44   : > { %459 = vmatpush.bf16.xpose.msra.mxu0 %v1118_v6  ;;  %v1133_v6 = vld [vmem:[%s1649_s22 + $0x18] sm:$0xff] }
  0x45   : > { %478 = vmatpush.bf16.xpose.msra.mxu1 %v1126_v7  ;;  %v1141_v7 = vld [vmem:[%s1649_s22 + $0x58] sm:$0xff]  ;;  %714 = vmatpush.bf16.msra.mxu2 %v1133_v6 }
  0x46   : > { %733 = vmatpush.bf16.msra.mxu3 %v1141_v7 }
  0x4c   : > { %460 = vmatpush.bf16.xpose.msra.mxu0 %v1117_v8  ;;  %v1132_v8 = vld [vmem:[%s1649_s22 + $0x10] sm:$0xff] }
  0x4d   : > { %479 = vmatpush.bf16.xpose.msra.mxu1 %v1125_v9  ;;  %v1140_v9 = vld [vmem:[%s1649_s22 + $0x50] sm:$0xff]  ;;  %715 = vmatpush.bf16.msra.mxu2 %v1132_v8 }
  0x4e   : > { %734 = vmatpush.bf16.msra.mxu3 %v1140_v9 }
  0x54   : > { %461 = vmatpush.bf16.xpose.msra.mxu0 %v1116_v10  ;;  %v1131_v10 = vld [vmem:[%s1649_s22 + $0x8] sm:$0xff] }
  0x55   : > { %480 = vmatpush.bf16.xpose.msra.mxu1 %v1124_v11  ;;  %v1139_v11 = vld [vmem:[%s1649_s22 + $0x48] sm:$0xff]  ;;  %716 = vmatpush.bf16.msra.mxu2 %v1131_v10 }
  0x56   : > { %735 = vmatpush.bf16.msra.mxu3 %v1139_v11 }
  0x5c   : > { %462 = vmatpush.bf16.xpose.msra.mxu0 %v1115_v12  ;;  %v1130_v12 = vld [vmem:[%s1649_s22] sm:$0xff] }
  0x5d   : > { %481 = vmatpush.bf16.xpose.msra.mxu1 %v1123_v13  ;;  %v1138_v13 = vld [vmem:[%s1649_s22 + $0x40] sm:$0xff]  ;;  %717 = vmatpush.bf16.msra.mxu2 %v1130_v12 }
  0x5e   : > { %736 = vmatpush.bf16.msra.mxu3 %v1138_v13 }
  0x64   : > { %463 = vmatpush.bf16.xpose.msra.mxu0 %v1114_v14 }
  0x65   : > { %482 = vmatpush.bf16.xpose.msra.mxu1 %v1122_v15 }
  0x6b   : > { %464 = vmatmul.bf16.vlgmr.msra.gmra.mxu0 %v1112_v16 }
  0x6c   : > { %483 = vmatmul.bf16.vlgmr.msra.gmra.mxu1 %v1112_v16 }
  0x7b   : > { %469 = vmatmul.bf16.gmra.mxu0 %v1113_v17 }
  0x7c   : > { %488 = vmatmul.bf16.gmra.mxu1 %v1113_v17 }
  0xe8   : > { %v465_v18 = vpop.f32.mrf.mxu0 }
  0xe9   : > { %v484_v19 = vpop.f32.mrf.mxu1 }
  0xea   : > { %v494_v20 = vmax.f32 %v465_v18, %v484_v19 }
  0xec   : > { %495 = vmax.xlane.f32.xlu0 %v494_v20 }
  0xf0   : > { %v467_v21 = vpop.f32.mrf.mxu0 }
  0xf1   : > { %v486_v22 = vpop.f32.mrf.mxu1 }
  0xf2   : > { %v497_v23 = vmax.f32 %v467_v21, %v486_v22 }
  0xf4   : > { %498 = vmax.xlane.f32.xlu0 %v497_v23 }
  0xf8   : > { %v470_v24 = vpop.f32.mrf.mxu0 }
  0xf9   : > { %v489_v25 = vpop.f32.mrf.mxu1 }
  0xfa   : > { %v500_v26 = vmax.f32 %v470_v24, %v489_v25 }
  0xfc   : > { %501 = vmax.xlane.f32.xlu1 %v500_v26 }
 0x100   : > { %v472_v27 = vpop.f32.mrf.mxu0 }
 0x101   : > { %v491_v28 = vpop.f32.mrf.mxu1 }
 0x102   : > { %v503_v29 = vmax.f32 %v472_v27, %v491_v28 }
 0x104   : > { %504 = vmax.xlane.f32.xlu1 %v503_v29 }
 0x15f   : > { %v496_v30 = vpop.xlane.xlu0 %495 }
 0x160   : > { %v506_v31 = vsub.f32 %v465_v18, %v496_v30  ;;  %v507_v32 = vsub.f32 %v484_v19, %v496_v30 }
 0x162   : > { %v514_v33 = vmul.f32 1.442695, %v506_v31  ;;  %v516_v34 = vmul.f32 1.442695, %v507_v32 }
 0x164   : > { %1235 = vpow2.f32 %v514_v33 }
 0x165   : > { %1237 = vpow2.f32 %v516_v34 }
 0x167   : > { %v499_v37 = vpop.xlane.xlu0 %498 }
 0x168   : > { %v508_v38 = vsub.f32 %v467_v21, %v499_v37  ;;  %v509_v39 = vsub.f32 %v486_v22, %v499_v37 }
 0x16a   : > { %v1655_v42 = vpop.eup %1235  ;;  %v518_v43 = vmul.f32 1.442695, %v508_v38  ;;  %v520_v44 = vmul.f32 1.442695, %v509_v39 }
 0x16b   : > { %v1238_v45 = vpop.eup %1237 }
 0x16c   : > { %1239 = vpow2.f32 %v518_v43  ;;  %v530_v46 = vadd.f32 %v1238_v45, %v1655_v42 }
 0x16d   : > { %1241 = vpow2.f32 %v520_v44 }
 0x16e   : > { %531 = vadd.xlane.f32.xlu2 %v530_v46 }
 0x16f   : > { %v502_v47 = vpop.xlane.xlu1 %501 }
 0x170   : > { %v510_v48 = vsub.f32 %v470_v24, %v502_v47  ;;  %v511_v49 = vsub.f32 %v489_v25, %v502_v47 }
 0x172   : > { %v1240_v50 = vpop.eup %1239  ;;  %v522_v51 = vmul.f32 1.442695, %v510_v48  ;;  %v524_v52 = vmul.f32 1.442695, %v511_v49 }
 0x173   : > { %v1242_v53 = vpop.eup %1241 }
 0x174   : > { %1243 = vpow2.f32 %v522_v51  ;;  %v533_v54 = vadd.f32 %v1242_v53, %v1240_v50 }
 0x175   : > { %1245 = vpow2.f32 %v524_v52 }
 0x176   : > { %534 = vadd.xlane.f32.xlu2 %v533_v54 }
 0x177   : > { %v505_v55 = vpop.xlane.xlu1 %504 }
 0x178   : > { %v512_v56 = vsub.f32 %v472_v27, %v505_v55  ;;  %v513_v57 = vsub.f32 %v491_v28, %v505_v55 }
 0x17a   : > { %v1244_v58 = vpop.eup %1243  ;;  %v526_v59 = vmul.f32 1.442695, %v512_v56  ;;  %v528_v60 = vmul.f32 1.442695, %v513_v57 }
 0x17b   : > { %v1246_v61 = vpop.eup %1245 }
 0x17c   : > { %1247 = vpow2.f32 %v526_v59  ;;  %v536_v62 = vadd.f32 %v1246_v61, %v1244_v58 }
 0x17d   : > { %1249 = vpow2.f32 %v528_v60 }
 0x17e   : > { %537 = vadd.xlane.f32.xlu0 %v536_v62 }
 0x182   : > { %v1248_v63 = vpop.eup %1247 }
 0x183   : > { %v1250_v0 = vpop.eup %1249 }
 0x184   : > { %v539_v1 = vadd.f32 %v1250_v0, %v1248_v63 }
 0x186   : > { %540 = vadd.xlane.f32.xlu1 %v539_v1 }
 0x1e1   : > { %v532_v14 = vpop.xlane.xlu2 %531 }
 0x1e2   : > { %1251 = vrcp.f32 %v532_v14 }
 0x1e8   : > { %v1252_v15 = vpop.eup %1251 }
 0x1e9   : > { %v546_v16 = vmul.f32 %v1252_v15, %v1655_v42  ;;  %v547_v17 = vmul.f32 %v1252_v15, %v1238_v45  ;;  %v535_v18 = vpop.xlane.xlu2 %534 }
 0x1ea   : > { %1253 = vrcp.f32 %v535_v18 }
 0x1eb   : > { %v554_v19 = vpack.c.bf16 %v547_v17, %v546_v16 }
 0x1ed   : > { %558 = vst [vmem:[%s1674_s30] sm:$0xff] %v554_v19  ;;  %v598_v25 = vunpack.c.l.b16 %v554_v19  ;;  %v599_v27 = vunpack.c.h.b16 %v554_v19 }
 0x1f0   : > { %v1254_v20 = vpop.eup %1253 }
 0x1f1   : > { %v548_v21 = vmul.f32 %v1254_v20, %v1240_v50  ;;  %v549_v22 = vmul.f32 %v1254_v20, %v1242_v53  ;;  %v538_v23 = vpop.xlane.xlu0 %537 }
 0x1f2   : > { %1255 = vrcp.f32 %v538_v23 }
 0x1f3   : > { %v555_v24 = vpack.c.bf16 %v549_v22, %v548_v21 }
 0x1f5   : > { %v600_v26 = vunpack.c.l.b16 %v555_v24  ;;  %v601_v28 = vunpack.c.h.b16 %v555_v24  ;;  %559 = vst [vmem:[%s1674_s30 + $0x8] sm:$0xff] %v555_v24 }
 0x1f7   : > { %v606_v29 = vpack.c.b16 %v600_v26, %v598_v25  ;;  %v607_v30 = vpack.c.b16 %v601_v28, %v599_v27 }
 0x1f8   : > { %v1256_v31 = vpop.eup %1255 }
 0x1f9   : > { %v550_v32 = vmul.f32 %v1256_v31, %v1244_v58  ;;  %v551_v33 = vmul.f32 %v1256_v31, %v1246_v61  ;;  %718 = vmatmul.bf16.vlgmr.msra.gmra.mxu2 %v606_v29  ;;  %737 = vmatmul.bf16.vlgmr.msra.gmra.mxu3 %v607_v30  ;;  %v541_v34 = vpop.xlane.xlu1 %540 }
 0x1fa   : > { %1257 = vrcp.f32 %v541_v34 }
 0x1fb   : > { %v556_v35 = vpack.c.bf16 %v551_v33, %v550_v32 }
 0x1fd   : > { %560 = vst [vmem:[%s1674_s30 + $0x10] sm:$0xff] %v556_v35  ;;  %v602_v40 = vunpack.c.l.b16 %v556_v35  ;;  %v603_v42 = vunpack.c.h.b16 %v556_v35 }
 0x200   : > { %v1258_v36 = vpop.eup %1257 }
 0x201   : > { %v552_v37 = vmul.f32 %v1258_v36, %v1248_v63  ;;  %v553_v38 = vmul.f32 %v1258_v36, %v1250_v0 }
 0x203   : > { %v557_v39 = vpack.c.bf16 %v553_v38, %v552_v37 }
 0x205   : > { %v604_v41 = vunpack.c.l.b16 %v557_v39  ;;  %v605_v43 = vunpack.c.h.b16 %v557_v39  ;;  %561 = vst [vmem:[%s1674_s30 + $0x18] sm:$0xff] %v557_v39 }
 0x207   : > { %v608_v44 = vpack.c.b16 %v604_v41, %v602_v40  ;;  %v609_v45 = vpack.c.b16 %v605_v43, %v603_v42 }
 0x209   : > { %723 = vmatmul.bf16.gmra.mxu2 %v608_v44  ;;  %742 = vmatmul.bf16.gmra.mxu3 %v609_v45 }
 0x20a   : > { %1376 = shalt.err (!%p1373_p13)
}
 0x20b   : > { %s1472_s25 = smov 128   ;;  %s1473_s7 = smov 8  }
 0x20c   : > { %1156 = dma.vmem_to_hbm [thread:$0]  (%p1591_p0), %s774_s5, 512, %s776_s9, %s753_s11, %s1472_s25, %s1472_s25, %s1473_s7  }
 0x20d   : > { %s308_s8 = scalar_lea.vmem [#allocation9], %s964_s24  ;;  %s791_s5 = scalar_lea.hbm %s1749_s4, %s1146_s29 }
 0x20e   : > { %s792_s9 = sshll.u32 %s308_s8, 4  ;;  %s794_s11 = sshll.u32 %s791_s5, 4  ;;  %s793_s9 = int_to_ptr.vmem [resolvable:$true] %s792_s9  ;;  %s795_s11 = int_to_ptr.hbm [resolvable:$true] %s794_s11 }
 0x20f   : > { %s758_s24 = scalar_lea.sflag [#allocation10], %s1620_s10  ;;  %s1391_s14 = sshra.s32 %s795_s11, 4  ;;  %s1392_s14 = int_to_ptr.hbm [resolvable:$true] %s1391_s14 }
 0x210   : > { %s1393_s23 = scalar_lea.hbm %s1392_s14, 32  ;;  %s1397_s29 = scalar_lea.hbm %s1749_s4, 64 }
 0x211   : > { %p1394_p3 = scmp.ne.s32.totalorder %s1392_s14, %s1393_s23  ;;  %p1398_p1 = scmp.lt.s32.totalorder %s1392_s14, %s1749_s4 }
 0x212   : > { %p1399_p7 = scmp.lt.s32.totalorder %s1397_s29, %s1393_s23 }
 0x213   : > { %p1395_p5 = pnand %p1394_p3, %p1591_p0 }
 0x214   : > { %p1400_p8 = por %p1399_p7, %p1398_p1 }
 0x215   : > { %p1396_p6 = pneg %p1395_p5 }
 0x217   : > { %p1401_p9 = pnand %p1400_p8, %p1396_p6 }
 0x27c   : > { %v719_v46 = vpop.f32.mrf.mxu2  ;;  %v738_v47 = vpop.f32.mrf.mxu3 }
 0x27d   : > { %v739_v48 = vadd.f32 %v738_v47, %v719_v46 }
 0x27f   : > { %748 = vst [vmem:[%s308_s8] sm:$0xff] %v739_v48 }
 0x284   : > { %v721_v49 = vpop.f32.mrf.mxu2  ;;  %v740_v50 = vpop.f32.mrf.mxu3 }
 0x285   : > { %v741_v51 = vadd.f32 %v740_v50, %v721_v49 }
 0x287   : > { %749 = vst [vmem:[%s308_s8 + $0x8] sm:$0xff] %v741_v51 }
 0x28c   : > { %v724_v52 = vpop.f32.mrf.mxu2  ;;  %v743_v53 = vpop.f32.mrf.mxu3 }
 0x28d   : > { %v744_v54 = vadd.f32 %v743_v53, %v724_v52 }
 0x28f   : > { %750 = vst [vmem:[%s308_s8 + $0x10] sm:$0xff] %v744_v54 }
 0x294   : > { %v726_v55 = vpop.f32.mrf.mxu2  ;;  %v745_v56 = vpop.f32.mrf.mxu3 }
 0x295   : > { %v746_v57 = vadd.f32 %v745_v56, %v726_v55 }
 0x297   : > { %751 = vst [vmem:[%s308_s8 + $0x18] sm:$0xff] %v746_v57 }
 0x298   : > { %1404 = shalt.err (!%p1401_p9)
}
 0x299   : > { %1157 = dma.vmem_to_hbm [thread:$0]  (%p1591_p0), %s793_s9, 512, %s795_s11, %s758_s24, %s1472_s25, %s1472_s25, %s1473_s7  }
 0x29a PF: > { %s809_s10 = sand.u32 1, %s1447_s15   ;;  %p1172_p10 = pnand %p953_p4, %p1595_p2 }
 0x29b   : > { %s810_s8 = scalar_lea.sflag [#allocation4], %s809_s10 }
 0x29c   : > { %p1173_p11 = pneg %p1172_p10 }
 0x29e   : > { %1438 = dma.done.wait (%p1173_p11), %s810_s8, 512  }
 0x29f   : > { %1440 = vsyncadd (%p1173_p11), %s810_s8, 4294966784  ;;  %s820_s12 = scalar_lea.sflag [#allocation10], %s809_s10 }
 0x2a0   : > { %1442 = dma.done.wait (%p1173_p11), %s820_s12, 512  }
 0x2a1   : > { %1444 = vsyncadd (%p1173_p11), %s820_s12, 4294966784  ;;  %s25_s20 = sadd.s32 1, %s1467_s20   ;;  %s1755_s15 = smov %s1451_s16 }
 0x2a2   : > { %p22_p12 = scmp.ge.s32.totalorder %s25_s20, 4   ;;  %s1756_s16 = smov %s1455_s17 }
 0x2a3   : > { %s1757_s17 = smov %s1550_s27  ;;  %s1758_s18 = smov %s1463_s19 }
 0x2a4   : > { %s1759_s19 = smov %s1761_s21  ;;  %24 = sbr.rel (!%p22_p12) target bundleno = 9 (0x9), region = 111 }
 0x2a9   :  { %826 = vsyncpa [#allocation3], 1 }
 0x2aa   :  { %828 = vsyncpa [#allocation3 + $0x1], 1 }
 0x2ab   :  { %829 = vsyncpa [#allocation6], 1 }
 0x2ac   :  { %831 = vsyncpa [#allocation6 + $0x1], 1 }
 0x2ad   :  { %832 = vsyncpa [#allocation4], 1 }
 0x2ae   :  { %834 = vsyncpa [#allocation4 + $0x1], 1 }
 0x2af   :  { %835 = vsyncpa [#allocation10], 1 }
 0x2b0   :  { %837 = vsyncpa [#allocation10 + $0x1], 1 }

</bundles_post_ra>
